<compile_context>
chip_gen: v7x
topology: tpu7x:2x2x1
jax: 0.10.0
libtpu: 0.0.40
codegen_flags: <defaults>
</compile_context>

<pallas_src>
import functools

import jax
import jax.numpy as jnp
from jax.experimental import pallas as pl
from jax.experimental.pallas import tpu as pltpu


def _round_up(x, m):
    return ((x + m - 1) // m) * m


# Batch rows per grid step.  Review guidance: 32-64 on v5e/v6e (128 MiB VMEM),
# 8-16 on v7x (64 MiB).  For small inference batches it shrinks to B so no
# padded-sample compute is wasted.
DEFAULT_B_BLK = 32


# ---------------------------------------------------------------------------
# Fused kernel: im2col conv (all kernel sizes) + masked max-pool + ReLU
#               + fc0 + ReLU + fc1
# ---------------------------------------------------------------------------
def _etextcnn_kernel(x_ref, wall_ref, mask_ref, bconv_ref, fc0w_ref, fc0b_ref,
                     fc1w_ref, fc1b_ref, o_ref, *, k_max, seq_len, b_blk):
    """Refs:
      x_ref:     (b_blk*Lpad, E)      bf16  embedded tokens, batch folded in M
      wall_ref:  (k_max*E, Wpad)      bf16  im2col conv weights, all k sizes
      mask_ref:  (Lpad, Wpad)         f32   0 where time step valid, -1e30 else
      bconv_ref: (1, Wpad)            f32   conv biases (band layout)
      fc0w_ref:  (Wpad, Hpad)         bf16
      fc0b_ref:  (1, Hpad)            f32
      fc1w_ref:  (Hpad, Cpad)         bf16
      fc1b_ref:  (1, Cpad)            f32
      o_ref:     (b_blk, Cpad)        f32   lane-dense logits (sliced outside)
    """
    m = b_blk * seq_len

    # ---- in-kernel im2col: fold the conv taps into the contraction dim ----
    # Tap j of the window is the input shifted up by j rows.  Wrap-around /
    # cross-sample rows only ever land in time positions that the additive
    # mask removes from the max, so a plain rotate is sufficient.
    x = x_ref[...].astype(jnp.float32)                         # (m, E)
    taps = [x]
    for j in range(1, k_max):
        taps.append(pltpu.roll(x, shift=m - j, axis=0))        # row t -> t+j
    xim = jnp.concatenate(taps, axis=-1).astype(jnp.bfloat16)  # (m, k_max*E)

    # ---- conv for ALL kernel sizes: one MXU matmul, K = k_max*E ----
    y = jnp.dot(xim, wall_ref[...],
                preferred_element_type=jnp.float32)            # (m, Wpad)

    # ---- masked global max over time (single vectorized reduce) ----
    w_pad = y.shape[-1]
    y3 = y.reshape(b_blk, seq_len, w_pad) + mask_ref[...]      # (b_blk,L,Wpad)
    pooled = jnp.max(y3, axis=1)                               # (b_blk, Wpad)
    # Bias after the max (valid: bias constant over time), then ReLU.
    pooled = jnp.maximum(pooled + bconv_ref[...], 0.0)

    # ---- fc0 + ReLU, fc1 -- intermediates stay on-chip, K is lane-dense ----
    h = jnp.dot(pooled.astype(jnp.bfloat16), fc0w_ref[...],
                preferred_element_type=jnp.float32) + fc0b_ref[...]
    h = jnp.maximum(h, 0.0)
    logits = jnp.dot(h.astype(jnp.bfloat16), fc1w_ref[...],
                     preferred_element_type=jnp.float32) + fc1b_ref[...]
    o_ref[...] = logits.astype(o_ref.dtype)


def etextcnn_forward(embedded, params, *, ksizes, nf, num_classes,
                     b_blk=DEFAULT_B_BLK):
    """embedded: (B, L, E) bf16.  Returns logits (B, num_classes) f32."""
    B, L, E = embedded.shape
    k_max = max(ksizes)
    assert L >= k_max, f"seq_len={L} must be >= max kernel size {k_max}"

    wall, bconv, fc0w, fc0b, fc1w, fc1b = params
    w_pad = wall.shape[1]
    c_pad = fc1w.shape[1]

    # Pad L to a multiple of 16 (bf16 sublane tiling); padded rows are zeros
    # and masked out of the time-max.
    l_pad = _round_up(L, 16)
    if l_pad != L:
        embedded = jnp.pad(embedded, ((0, 0), (0, l_pad - L), (0, 0)))

    # Adaptive batch block: no padded-sample waste for small batches.
    b_blk = max(1, min(b_blk, B))
    b_padded = _round_up(B, b_blk)
    if b_padded != B:
        embedded = jnp.pad(embedded, ((0, b_padded - B), (0, 0), (0, 0)))
    x_flat = embedded.reshape(b_padded * l_pad, E)

    # Additive time-validity mask: band of kernel size k is valid for
    # t < L - k + 1; padded lanes stay "valid" but are identically zero.
    rows = jnp.arange(l_pad)[:, None]
    mask = jnp.zeros((l_pad, w_pad), jnp.float32)
    for i, k in enumerate(ksizes):
        band = jnp.where(rows >= (L - k + 1), -1e30, 0.0)
        mask = mask.at[:, i * nf:(i + 1) * nf].set(
            jnp.broadcast_to(band, (l_pad, nf)))

    kernel = functools.partial(_etextcnn_kernel, k_max=k_max,
                               seq_len=l_pad, b_blk=b_blk)

    # Deliberate VMEM budget (review, v7x = 64 MiB physical): dominant terms
    # are the f32 xim / y tiles of the current block plus the (tiny,
    # grid-invariant) weights.
    def _bytes(a):
        return a.size * a.dtype.itemsize
    weight_bytes = sum(_bytes(a) for a in params) + _bytes(mask)
    vmem_est = (2 * b_blk * l_pad * E * 2           # x block, double-buffered
                + 2 * b_blk * c_pad * 4             # out block, double-buffered
                + 2 * weight_bytes                  # invariant operands
                + 6 * b_blk * l_pad * max(w_pad, k_max * E) * 4)  # f32 temps
    vmem_limit = int(min(64 * 2 ** 20, max(32 * 2 ** 20, 2 * vmem_est)))

    # TODO(synk): for tiny batches on v7x (2 TCs) add a second parallel grid
    # axis (e.g. over Wpad chunks) so a 1-step grid does not idle one core.
    out = pl.pallas_call(
        kernel,
        out_shape=jax.ShapeDtypeStruct((b_padded, c_pad), jnp.float32),
        grid=(b_padded // b_blk,),
        in_specs=[
            pl.BlockSpec((b_blk * l_pad, E), lambda i: (i, 0)),
            # Grid-invariant operands: whole-array blocks with constant
            # index_map (fetched once; on v7x they could additionally be
            # marked pipeline_mode=pl.Buffered(1) to drop the second buffer).
            pl.BlockSpec(wall.shape, lambda i: (0, 0)),
            pl.BlockSpec(mask.shape, lambda i: (0, 0)),
            pl.BlockSpec(bconv.shape, lambda i: (0, 0)),
            pl.BlockSpec(fc0w.shape, lambda i: (0, 0)),
            pl.BlockSpec(fc0b.shape, lambda i: (0, 0)),
            pl.BlockSpec(fc1w.shape, lambda i: (0, 0)),
            pl.BlockSpec(fc1b.shape, lambda i: (0, 0)),
        ],
        out_specs=pl.BlockSpec((b_blk, c_pad), lambda i: (i, 0)),
        compiler_params=pltpu.CompilerParams(
            dimension_semantics=("parallel",),
            vmem_limit_bytes=vmem_limit),
    )(x_flat, wall, mask, bconv, fc0w, fc0b, fc1w, fc1b)
    return out[:B, :num_classes]


# ---------------------------------------------------------------------------
# ETextCNN model (inference)
# ---------------------------------------------------------------------------
class ETextCNNPallas:
    def __init__(self, key, vocab_size, embedding_dim, num_filters,
                 kernel_sizes, num_classes, hidden_dim):
        self.kernel_sizes = tuple(kernel_sizes)
        self.num_filters = num_filters
        self.num_classes = num_classes
        V, E, Nf, C, H = (vocab_size, embedding_dim, num_filters,
                          num_classes, hidden_dim)
        nK = len(self.kernel_sizes)
        k_max = max(self.kernel_sizes)

        keys = jax.random.split(key, 5 + 2 * nK)
        # Embedding (V, E), padding_idx=0 -> row 0 zero.  Stored in bf16 so
        # the XLA gather moves half the HBM bytes (activation bandwidth is
        # the first-order cost for this model).
        emb = 0.1 * jax.random.normal(keys[0], (V, E), jnp.float32)
        self.embedding = emb.at[0].set(0.0).astype(jnp.bfloat16)

        # Conv1d weights: PyTorch shape (Nf, E, k); keep (k, E, Nf) f32 masters
        # with w[j] == torch_weight[:, :, j].T
        self.conv_w, self.conv_b = [], []
        for i, k in enumerate(self.kernel_sizes):
            w_torch = 0.1 * jax.random.normal(keys[1 + 2 * i], (Nf, E, k),
                                              jnp.float32)
            self.conv_w.append(jnp.transpose(w_torch, (2, 1, 0)))
            self.conv_b.append(
                0.1 * jax.random.normal(keys[2 + 2 * i], (Nf,), jnp.float32))

        # fc0: torch (H, nK*Nf) -> stored (nK*Nf, H); fc1: (C, H) -> (H, C)
        self.fc0_w = 0.1 * jax.random.normal(keys[1 + 2 * nK], (nK * Nf, H),
                                             jnp.float32)
        self.fc0_b = 0.1 * jax.random.normal(keys[2 + 2 * nK], (H,),
                                             jnp.float32)
        self.fc1_w = 0.1 * jax.random.normal(keys[3 + 2 * nK], (H, C),
                                             jnp.float32)
        self.fc1_b = 0.1 * jax.random.normal(keys[4 + 2 * nK], (C,),
                                             jnp.float32)

        # ---- pack & pad parameters once for the fused kernel ----
        w_tot = nK * Nf
        w_pad = _round_up(w_tot, 128)   # pooled lane width == fc0 K
        h_pad = _round_up(H, 128)
        c_pad = _round_up(C, 128)

        # im2col conv weight: wall[j*E + e, i*Nf + f] = conv_w_i[j, e, f]
        # (zeros for taps j >= Ks[i]); contraction dim K = k_max*E.
        wall = jnp.zeros((k_max * E, w_pad), jnp.float32)
        for i, (k, w) in enumerate(zip(self.kernel_sizes, self.conv_w)):
            for j in range(k):
                wall = wall.at[j * E:(j + 1) * E, i * Nf:(i + 1) * Nf].set(w[j])
        self._wall = wall.astype(jnp.bfloat16)

        bconv = jnp.zeros((1, w_pad), jnp.float32)
        for i, b in enumerate(self.conv_b):
            bconv = bconv.at[0, i * Nf:(i + 1) * Nf].set(b)
        self._bconv = bconv

        self._fc0_w = (jnp.zeros((w_pad, h_pad), jnp.float32)
                       .at[:w_tot, :H].set(self.fc0_w).astype(jnp.bfloat16))
        self._fc0_b = jnp.zeros((1, h_pad), jnp.float32).at[0, :H].set(self.fc0_b)
        self._fc1_w = (jnp.zeros((h_pad, c_pad), jnp.float32)
                       .at[:H, :C].set(self.fc1_w).astype(jnp.bfloat16))
        self._fc1_b = jnp.zeros((1, c_pad), jnp.float32).at[0, :C].set(self.fc1_b)

    def __call__(self, inputs):
        # inputs: (B, L) int32 token ids
        # TODO(synk): fuse the embedding gather into the kernel via
        #             scalar-prefetched ids + per-row DMA to delete the
        #             remaining HBM round trip; kept in XLA (bf16) for now.
        embedded = jnp.take(self.embedding, inputs, axis=0)   # (B, L, E) bf16
        # Dropout is identity here (inference / model.eval()).
        params = (self._wall, self._bconv, self._fc0_w, self._fc0_b,
                  self._fc1_w, self._fc1_b)
        return etextcnn_forward(embedded, params,
                                ksizes=self.kernel_sizes,
                                nf=self.num_filters,
                                num_classes=self.num_classes)


# ---------------------------------------------------------------------------
# Pure-JAX reference (same bf16 inputs / f32 accumulation)
# ---------------------------------------------------------------------------
def _reference(model, inputs):
    emb = jnp.take(model.embedding, inputs, axis=0)            # (B, L, E) bf16
    B, L, _ = emb.shape
    pooled = []
    for k, w, b in zip(model.kernel_sizes, model.conv_w, model.conv_b):
        l_out = L - k + 1
        acc = jnp.zeros((B, l_out, w.shape[2]), jnp.float32)
        for j in range(k):
            acc = acc + jnp.einsum("ble,ef->blf",
                                   emb[:, j:j + l_out, :],
                                   w[j].astype(jnp.bfloat16),
                                   preferred_element_type=jnp.float32)
        pooled.append(jnp.maximum(jnp.max(acc, axis=1) + b[None, :], 0.0))
    x_cat = jnp.concatenate(pooled, axis=1)
    h = jnp.maximum(
        jnp.dot(x_cat.astype(jnp.bfloat16), model.fc0_w.astype(jnp.bfloat16),
                preferred_element_type=jnp.float32) + model.fc0_b, 0.0)
    return jnp.dot(h.astype(jnp.bfloat16), model.fc1_w.astype(jnp.bfloat16),
                   preferred_element_type=jnp.float32) + model.fc1_b


# ---------------------------------------------------------------------------
if __name__ == "__main__":
    key = jax.random.PRNGKey(0)
    k_params, k_tokens = jax.random.split(key)

    # Small, forward-consistent config (k_max*E = 128 -> full MXU K pass).
    V, E, Nf = 50, 32, 8
    Ks = (2, 3, 4)
    C, H = 5, 16
    B, L = 2, 16

    model = ETextCNNPallas(k_params, V, E, Nf, Ks, C, H)
    tokens = jax.random.randint(k_tokens, (B, L), 0, V, dtype=jnp.int32)

    out = jax.block_until_ready(model(tokens))
    ref = _reference(model, tokens)

    assert out.shape == (B, C), out.shape
    assert jnp.allclose(out, ref, atol=5e-3, rtol=5e-3), (out, ref)

    print("KERNEL_OK")
</pallas_src>

<mosaic_0001>
module attributes {stable_mosaic.version = 11 : i64} {
  func.func @_etextcnn_kernel(%arg0: i32, %arg1: memref<32x32xbf16, #tpu.memory_space<vmem>>, %arg2: memref<128x128xbf16, #tpu.memory_space<vmem>>, %arg3: memref<16x128xf32, #tpu.memory_space<vmem>>, %arg4: memref<1x128xf32, #tpu.memory_space<vmem>>, %arg5: memref<128x128xbf16, #tpu.memory_space<vmem>>, %arg6: memref<1x128xf32, #tpu.memory_space<vmem>>, %arg7: memref<128x128xbf16, #tpu.memory_space<vmem>>, %arg8: memref<1x128xf32, #tpu.memory_space<vmem>>, %arg9: memref<2x128xf32, #tpu.memory_space<vmem>>) attributes {dimension_semantics = [#tpu.dimension_semantics<parallel>], iteration_bounds = array<i64: 1>, scalar_prefetch = 0 : i64, scratch_operands = 0 : i64, tpu.core_type = #tpu.core_type<tc>, window_params = [{transform_indices = @transform_0, window_bounds = array<i64: 32, 32>}, {pipeline_mode = #tpu.pipeline_mode<synchronous>, transform_indices = @transform_1, window_bounds = array<i64: 128, 128>}, {pipeline_mode = #tpu.pipeline_mode<synchronous>, transform_indices = @transform_2, window_bounds = array<i64: 16, 128>}, {pipeline_mode = #tpu.pipeline_mode<synchronous>, transform_indices = @transform_3, window_bounds = array<i64: 1, 128>}, {pipeline_mode = #tpu.pipeline_mode<synchronous>, transform_indices = @transform_4, window_bounds = array<i64: 128, 128>}, {pipeline_mode = #tpu.pipeline_mode<synchronous>, transform_indices = @transform_5, window_bounds = array<i64: 1, 128>}, {pipeline_mode = #tpu.pipeline_mode<synchronous>, transform_indices = @transform_6, window_bounds = array<i64: 128, 128>}, {pipeline_mode = #tpu.pipeline_mode<synchronous>, transform_indices = @transform_7, window_bounds = array<i64: 1, 128>}, {transform_indices = @transform_8, window_bounds = array<i64: 2, 128>}]} {
    %c0 = arith.constant 0 : index
    %c0_0 = arith.constant 0 : index
    %0 = vector.load %arg1[%c0, %c0_0] : memref<32x32xbf16, #tpu.memory_space<vmem>>, vector<32x32xbf16>
    %1 = arith.extf %0 : vector<32x32xbf16> to vector<32x32xf32>
    %c31_i32 = arith.constant 31 : i32
    %2 = tpu.dynamic_rotate %1 by %c31_i32 dim 0 : vector<32x32xf32>, i32 -> vector<32x32xf32>
    %c30_i32 = arith.constant 30 : i32
    %3 = tpu.dynamic_rotate %1 by %c30_i32 dim 0 : vector<32x32xf32>, i32 -> vector<32x32xf32>
    %c29_i32 = arith.constant 29 : i32
    %4 = tpu.dynamic_rotate %1 by %c29_i32 dim 0 : vector<32x32xf32>, i32 -> vector<32x32xf32>
    %5 = tpu.concatenate %1, %2, %3, %4 in 1 : vector<32x32xf32>, vector<32x32xf32>, vector<32x32xf32>, vector<32x32xf32> -> vector<32x128xf32>
    %6 = arith.truncf %5 : vector<32x128xf32> to vector<32x128xbf16>
    %c0_1 = arith.constant 0 : index
    %c0_2 = arith.constant 0 : index
    %7 = vector.load %arg2[%c0_1, %c0_2] : memref<128x128xbf16, #tpu.memory_space<vmem>>, vector<128x128xbf16>
    %cst = arith.constant dense<0.000000e+00> : vector<32x128xf32>
    %8 = tpu.matmul %6, %7, %cst {dimension_numbers = #tpu.dot_dimension_numbers<[1], [0], [0], [1], [0, 0, 1, 1], [], []>} : vector<32x128xbf16>, vector<128x128xbf16>, vector<32x128xf32> -> vector<32x128xf32>
    %9 = vector.shape_cast %8 : vector<32x128xf32> to vector<2x16x128xf32>
    %c0_3 = arith.constant 0 : index
    %c0_4 = arith.constant 0 : index
    %10 = vector.load %arg3[%c0_3, %c0_4] : memref<16x128xf32, #tpu.memory_space<vmem>>, vector<16x128xf32>
    %11 = vector.shape_cast %10 : vector<16x128xf32> to vector<1x16x128xf32>
    %12 = vector.broadcast %11 : vector<1x16x128xf32> to vector<2x16x128xf32>
    %13 = arith.addf %9, %12 : vector<2x16x128xf32>
    %cst_5 = arith.constant dense<0xFF800000> : vector<2x128xf32>
    %14 = vector.multi_reduction <maximumf>, %13, %cst_5 [1] : vector<2x16x128xf32> to vector<2x128xf32>
    %c0_6 = arith.constant 0 : index
    %c0_7 = arith.constant 0 : index
    %15 = vector.load %arg4[%c0_6, %c0_7] : memref<1x128xf32, #tpu.memory_space<vmem>>, vector<1x128xf32>
    %16 = vector.broadcast %15 : vector<1x128xf32> to vector<2x128xf32>
    %17 = arith.addf %14, %16 : vector<2x128xf32>
    %cst_8 = arith.constant 0.000000e+00 : f32
    %18 = vector.broadcast %cst_8 : f32 to vector<2x128xf32>
    %19 = arith.maximumf %17, %18 : vector<2x128xf32>
    %20 = arith.truncf %19 : vector<2x128xf32> to vector<2x128xbf16>
    %c0_9 = arith.constant 0 : index
    %c0_10 = arith.constant 0 : index
    %21 = vector.load %arg5[%c0_9, %c0_10] : memref<128x128xbf16, #tpu.memory_space<vmem>>, vector<128x128xbf16>
    %cst_11 = arith.constant dense<0.000000e+00> : vector<2x128xf32>
    %22 = tpu.matmul %20, %21, %cst_11 {dimension_numbers = #tpu.dot_dimension_numbers<[1], [0], [0], [1], [0, 0, 1, 1], [], []>} : vector<2x128xbf16>, vector<128x128xbf16>, vector<2x128xf32> -> vector<2x128xf32>
    %c0_12 = arith.constant 0 : index
    %c0_13 = arith.constant 0 : index
    %23 = vector.load %arg6[%c0_12, %c0_13] : memref<1x128xf32, #tpu.memory_space<vmem>>, vector<1x128xf32>
    %24 = vector.broadcast %23 : vector<1x128xf32> to vector<2x128xf32>
    %25 = arith.addf %22, %24 : vector<2x128xf32>
    %cst_14 = arith.constant 0.000000e+00 : f32
    %26 = vector.broadcast %cst_14 : f32 to vector<2x128xf32>
    %27 = arith.maximumf %25, %26 : vector<2x128xf32>
    %28 = arith.truncf %27 : vector<2x128xf32> to vector<2x128xbf16>
    %c0_15 = arith.constant 0 : index
    %c0_16 = arith.constant 0 : index
    %29 = vector.load %arg7[%c0_15, %c0_16] : memref<128x128xbf16, #tpu.memory_space<vmem>>, vector<128x128xbf16>
    %cst_17 = arith.constant dense<0.000000e+00> : vector<2x128xf32>
    %30 = tpu.matmul %28, %29, %cst_17 {dimension_numbers = #tpu.dot_dimension_numbers<[1], [0], [0], [1], [0, 0, 1, 1], [], []>} : vector<2x128xbf16>, vector<128x128xbf16>, vector<2x128xf32> -> vector<2x128xf32>
    %c0_18 = arith.constant 0 : index
    %c0_19 = arith.constant 0 : index
    %31 = vector.load %arg8[%c0_18, %c0_19] : memref<1x128xf32, #tpu.memory_space<vmem>>, vector<1x128xf32>
    %32 = vector.broadcast %31 : vector<1x128xf32> to vector<2x128xf32>
    %33 = arith.addf %30, %32 : vector<2x128xf32>
    %c0_20 = arith.constant 0 : index
    %c0_21 = arith.constant 0 : index
    %34 = vector.load %arg9[%c0_20, %c0_21] : memref<2x128xf32, #tpu.memory_space<vmem>>, vector<2x128xf32>
    tpu.vector_store %arg9[%c0_20, %c0_21], %33 {strides = array<i32>} : memref<2x128xf32, #tpu.memory_space<vmem>>, vector<2x128xf32>,
    return
  }
  func.func @transform_0(%arg0: i32) -> (i32, i32) {
    %c0_i32 = arith.constant 0 : i32
    %c0_i32_0 = arith.constant 0 : i32
    return %arg0, %c0_i32 : i32, i32
  }
  func.func @transform_1(%arg0: i32) -> (i32, i32) {
    %c0_i32 = arith.constant 0 : i32
    %c0_i32_0 = arith.constant 0 : i32
    %c0_i32_1 = arith.constant 0 : i32
    return %c0_i32, %c0_i32_0 : i32, i32
  }
  func.func @transform_2(%arg0: i32) -> (i32, i32) {
    %c0_i32 = arith.constant 0 : i32
    %c0_i32_0 = arith.constant 0 : i32
    %c0_i32_1 = arith.constant 0 : i32
    return %c0_i32, %c0_i32_0 : i32, i32
  }
  func.func @transform_3(%arg0: i32) -> (i32, i32) {
    %c0_i32 = arith.constant 0 : i32
    %c0_i32_0 = arith.constant 0 : i32
    %c0_i32_1 = arith.constant 0 : i32
    return %c0_i32, %c0_i32_0 : i32, i32
  }
  func.func @transform_4(%arg0: i32) -> (i32, i32) {
    %c0_i32 = arith.constant 0 : i32
    %c0_i32_0 = arith.constant 0 : i32
    %c0_i32_1 = arith.constant 0 : i32
    return %c0_i32, %c0_i32_0 : i32, i32
  }
  func.func @transform_5(%arg0: i32) -> (i32, i32) {
    %c0_i32 = arith.constant 0 : i32
    %c0_i32_0 = arith.constant 0 : i32
    %c0_i32_1 = arith.constant 0 : i32
    return %c0_i32, %c0_i32_0 : i32, i32
  }
  func.func @transform_6(%arg0: i32) -> (i32, i32) {
    %c0_i32 = arith.constant 0 : i32
    %c0_i32_0 = arith.constant 0 : i32
    %c0_i32_1 = arith.constant 0 : i32
    return %c0_i32, %c0_i32_0 : i32, i32
  }
  func.func @transform_7(%arg0: i32) -> (i32, i32) {
    %c0_i32 = arith.constant 0 : i32
    %c0_i32_0 = arith.constant 0 : i32
    %c0_i32_1 = arith.constant 0 : i32
    return %c0_i32, %c0_i32_0 : i32, i32
  }
  func.func @transform_8(%arg0: i32) -> (i32, i32) {
    %c0_i32 = arith.constant 0 : i32
    %c0_i32_0 = arith.constant 0 : i32
    return %arg0, %c0_i32 : i32, i32
  }
}

</mosaic_0001>

<bundles_post_ra>
// kernel: tpu_custom_call.1
= control target key start
LH: loop header
LB: loop body
LE: loop exit
PB: predicated region body
PF: predicated region fallthrough
CT: control target
= control target key end

     0   :  { %13 = vsyncpa [#allocation3], 0  ;;  %s1156_s0 = inlined_call_operand.hbm [shape: bf16[32,32], index: 0, kind: input, shape index: {}]   ;;  %s1157_s1 = inlined_call_operand.hbm [shape: bf16[128,128], index: 1, kind: input, shape index: {}]   ;;  %s1158_s2 = inlined_call_operand.hbm [shape: f32[16,128], index: 2, kind: input, shape index: {}]   ;;  %s1159_s3 = inlined_call_operand.vmem [shape: f32[1,128], index: 3, kind: input, shape index: {}]   ;;  %s1160_s4 = inlined_call_operand.hbm [shape: bf16[128,128], index: 4, kind: input, shape index: {}]   ;;  %s1161_s5 = inlined_call_operand.vmem [shape: f32[1,128], index: 5, kind: input, shape index: {}]   ;;  %s1162_s6 = inlined_call_operand.hbm [shape: bf16[128,128], index: 6, kind: input, shape index: {}]   ;;  %s1163_s7 = inlined_call_operand.vmem [shape: f32[1,128], index: 7, kind: input, shape index: {}]   ;;  %s1164_s8 = inlined_call_operand.hbm [shape: f32[2,128], index: 8, kind: output, shape index: {}]  }
   0x1   :  { %14 = vsyncpa [#allocation6], 0 }
   0x2   :  { %15 = vsyncpa [#allocation9], 0 }
   0x3   :  { %16 = vsyncpa [#allocation4], 0  ;;  %s930_s27 = smov [#allocation5]   ;;  %s931_s29 = smov [#allocation8]  }
   0x4   :  { %s34_s28 = sshll.u32 %s930_s27, 4  ;;  %s60_s30 = sshll.u32 %s931_s29, 4  ;;  %s35_s28 = int_to_ptr.vmem [resolvable:$true] %s34_s28  ;;  %s989_s30 = int_to_ptr.vmem [resolvable:$true] %s60_s30 }
   0x5   :  { %s790_s11 = scalar_lea.hbm %s1157_s1, 1024 }
   0x6   :  { %p791_p0 = scmp.ne.s32.totalorder %s1157_s1, %s790_s11  ;;  %p794_p1 = scmp.lt.u32.totalorder %s790_s11, %s1157_s1 }
   0x8   :  { %p796_p2 = pnand %p794_p1, %p791_p0 }
   0xa   :  { %799 = shalt.err (!%p796_p2)
}
   0xb   :  { %s800_s16 = scalar_lea.vmem %s35_s28, 1024  ;;  %p805_p4 = scmp.lt.s32.totalorder %s35_s28, %s35_s28 }
   0xc   :  { %p801_p3 = scmp.ne.s32.totalorder %s35_s28, %s800_s16  ;;  %p806_p5 = scmp.lt.s32.totalorder %s800_s16, %s800_s16 }
   0xe   :  { %p807_p6 = por %p806_p5, %p805_p4 }
  0x10   :  { %p808_p7 = pnand %p807_p6, %p801_p3 }
  0x12   :  { %811 = shalt.err (!%p808_p7)
}
  0x13   :  { %s932_s17 = smov 64   ;;  %s933_s18 = smov 4  }
  0x14   :  { %40 = dma.hbm_to_vmem [thread:$0]  %s1157_s1, 1024, %s35_s28, [#allocation6], %s932_s17, %s932_s17, %s933_s18  }
  0x15   :  { %s812_s23 = scalar_lea.hbm %s1160_s4, 1024 }
  0x16   :  { %p813_p8 = scmp.ne.s32.totalorder %s1160_s4, %s812_s23  ;;  %p816_p9 = scmp.lt.u32.totalorder %s812_s23, %s1160_s4 }
  0x18   :  { %p818_p10 = pnand %p816_p9, %p813_p8 }
  0x1a   :  { %821 = shalt.err (!%p818_p10)
}
  0x1b   :  { %s822_s29 = scalar_lea.vmem %s989_s30, 1024  ;;  %p827_p12 = scmp.lt.s32.totalorder %s989_s30, %s989_s30 }
  0x1c   :  { %p823_p11 = scmp.ne.s32.totalorder %s989_s30, %s822_s29  ;;  %p828_p13 = scmp.lt.s32.totalorder %s822_s29, %s822_s29 }
  0x1e   :  { %p829_p0 = por %p828_p13, %p827_p12 }
  0x20   :  { %p830_p1 = pnand %p829_p0, %p823_p11 }
  0x22   :  { %833 = shalt.err (!%p830_p1)
}
  0x23   :  { %66 = dma.hbm_to_vmem [thread:$0]  %s1160_s4, 1024, %s989_s30, [#allocation9], %s932_s17, %s932_s17, %s933_s18  }
  0x24   :  { %s934_s9 = smov [#allocation2]   ;;  %s935_s11 = smov [#allocation7]  }
  0x25   :  { %s22_s10 = sshll.u32 %s934_s9, 4  ;;  %s46_s12 = sshll.u32 %s935_s11, 4  ;;  %s23_s10 = int_to_ptr.vmem [resolvable:$true] %s22_s10  ;;  %s1026_s12 = int_to_ptr.vmem [resolvable:$true] %s46_s12 }
  0x26   :  { %s834_s15 = scalar_lea.hbm %s1156_s0, 256 }
  0x27   :  { %p835_p2 = scmp.ne.s32.totalorder %s1156_s0, %s834_s15  ;;  %p838_p3 = scmp.lt.u32.totalorder %s834_s15, %s1156_s0 }
  0x29   :  { %p840_p4 = pnand %p838_p3, %p835_p2 }
  0x2b   :  { %843 = shalt.err (!%p840_p4)
}
  0x2c   :  { %s844_s4 = scalar_lea.vmem %s23_s10, 256  ;;  %p849_p6 = scmp.lt.s32.totalorder %s23_s10, %s23_s10 }
  0x2d   :  { %p845_p5 = scmp.ne.s32.totalorder %s23_s10, %s844_s4  ;;  %p850_p7 = scmp.lt.s32.totalorder %s844_s4, %s844_s4 }
  0x2f   :  { %p851_p8 = por %p850_p7, %p849_p6 }
  0x31   :  { %p852_p9 = pnand %p851_p8, %p845_p5 }
  0x33   :  { %855 = shalt.err (!%p852_p9)
}
  0x34   :  { %28 = dma.hbm_to_vmem [thread:$0]  %s1156_s0, 256, %s23_s10, [#allocation3], %s932_s17, %s932_s17, %s933_s18  }
  0x35   :  { %s856_s25 = scalar_lea.hbm %s1158_s2, 256 }
  0x36   :  { %p857_p10 = scmp.ne.s32.totalorder %s1158_s2, %s856_s25  ;;  %p860_p11 = scmp.lt.u32.totalorder %s856_s25, %s1158_s2 }
  0x38   :  { %p862_p12 = pnand %p860_p11, %p857_p10 }
  0x3a   :  { %865 = shalt.err (!%p862_p12)
}
  0x3b   :  { %s866_s28 = scalar_lea.vmem %s1026_s12, 256  ;;  %p871_p0 = scmp.lt.s32.totalorder %s1026_s12, %s1026_s12 }
  0x3c   :  { %p867_p13 = scmp.ne.s32.totalorder %s1026_s12, %s866_s28  ;;  %p872_p1 = scmp.lt.s32.totalorder %s866_s28, %s866_s28 }
  0x3e   :  { %p873_p2 = por %p872_p1, %p871_p0 }
  0x40   :  { %p874_p3 = pnand %p873_p2, %p867_p13 }
  0x42   :  { %877 = shalt.err (!%p874_p3)
}
  0x43   :  { %s936_s0 = smov 128   ;;  %s937_s9 = smov 8  }
  0x44   :  { %52 = dma.hbm_to_vmem [thread:$0]  %s1158_s2, 256, %s1026_s12, [#allocation6], %s936_s0, %s936_s0, %s937_s9  }
  0x45   :  { %s938_s13 = smov [#allocation10]   ;;  %s878_s19 = scalar_lea.hbm %s1162_s6, 1024 }
  0x46   :  { %s74_s14 = sshll.u32 %s938_s13, 4  ;;  %p879_p4 = scmp.ne.s32.totalorder %s1162_s6, %s878_s19  ;;  %s75_s14 = int_to_ptr.vmem [resolvable:$true] %s74_s14 }
  0x47   :  { %p882_p5 = scmp.lt.u32.totalorder %s878_s19, %s1162_s6 }
  0x49   :  { %p884_p6 = pnand %p882_p5, %p879_p4 }
  0x4b   :  { %887 = shalt.err (!%p884_p6)
}
  0x4c   :  { %s888_s22 = scalar_lea.vmem %s75_s14, 1024  ;;  %p893_p8 = scmp.lt.s32.totalorder %s75_s14, %s75_s14 }
  0x4d   :  { %p889_p7 = scmp.ne.s32.totalorder %s75_s14, %s888_s22  ;;  %p894_p9 = scmp.lt.s32.totalorder %s888_s22, %s888_s22 }
  0x4f   :  { %p895_p10 = por %p894_p9, %p893_p8 }
  0x51   :  { %p896_p11 = pnand %p895_p10, %p889_p7 }
  0x53   :  { %899 = shalt.err (!%p896_p11)
}
  0x54   :  { %80 = dma.hbm_to_vmem [thread:$0]  %s1162_s6, 1024, %s75_s14, [#allocation9], %s932_s17, %s932_s17, %s933_s18  }
  0x55   :  { %922 = dma.done.wait [#allocation3], 256  }
  0x56   :  { %923 = vsyncadd [#allocation3], 4294967040 }
  0x57   :  { %924 = dma.done.wait [#allocation6], 1280  }
  0x58   :  { %925 = vsyncadd [#allocation6], 4294966016 }
  0x59   :  { %926 = dma.done.wait [#allocation9], 2048  }
  0x5a   :  { %927 = vsyncadd [#allocation9], 4294965248  ;;  %v111_v0 = vlaneseq  ;;  %v626_v2 = vld [vmem:[#allocation2] sm:$0xff]   ;;  %v633_v3 = vld [vmem:[#allocation2 + $0x8] sm:$0xff]   ;;  %s939_s6 = smov 32   ;;  %s940_s18 = smov 96  }
  0x5b   :  { %v1075_v4 = vunpack.c.l.bf16 %v626_v2  ;;  %v1077_v5 = vunpack.c.h.bf16 %v626_v2  ;;  %v1079_v6 = vunpack.c.l.bf16 %v633_v3  ;;  %v1081_v7 = vunpack.c.h.bf16 %v633_v3  ;;  %v766_v8 = vld [vmem:[#allocation5] sm:$0xff]   ;;  %v767_v9 = vld [vmem:[#allocation5 + $0x8] sm:$0xff]   ;;  %v768_v18 = vld [vmem:[#allocation5 + $0x10] sm:$0xff]   ;;  %s943_s27 = smov [#allocation11]  }
  0x5c   :  { %v112_v1 = vshrl.u32 %v111_v0, 7  ;;  %662 = vmatprep.subr.bf16.mxu0 %v766_v8  ;;  %v769_v35 = vld [vmem:[#allocation5 + $0x18] sm:$0xff]   ;;  %v770_v40 = vld [vmem:[#allocation5 + $0x20] sm:$0xff]   ;;  %v771_v43 = vld [vmem:[#allocation5 + $0x28] sm:$0xff]   ;;  %vm184_vm3 = vcmask 261120   ;;  %vm189_vm4 = vcmask 523264  }
  0x5d   :  { %v118_v10 = vrot.slane %v1075_v4, 2  ;;  %v119_v11 = vrot.slane %v1077_v5, 2  ;;  %v120_v12 = vrot.slane %v1079_v6, 2  ;;  %v107_v13 = vrot.slane %v1075_v4, 1  ;;  %663 = vmatpush3.bf16.msra.mxu0 %v766_v8  ;;  %v772_v44 = vld [vmem:[#allocation5 + $0x30] sm:$0xff]   ;;  %v773_v45 = vld [vmem:[#allocation5 + $0x38] sm:$0xff]  }
  0x5e   :  { %vm122_vm0 = vcmp.lt.s32.totalorder %v112_v1, 6  ;;  %vm113_vm1 = vcmp.lt.s32.totalorder %v112_v1, 7  ;;  %vm131_vm2 = vcmp.lt.s32.totalorder %v112_v1, 5  ;;  %v108_v14 = vrot.slane %v1077_v5, 1  ;;  %664 = vmatprep.subr.bf16.mxu0 %v767_v9  ;;  %s587_s29 = sshll.u32 %s943_s27, 4  ;;  %s588_s29 = int_to_ptr.vmem [resolvable:$true] %s587_s29 }
  0x5f   :  { %v109_v15 = vrot.slane %v1079_v6, 1  ;;  %v121_v16 = vrot.slane %v1081_v7, 2  ;;  %v110_v17 = vrot.slane %v1081_v7, 1  ;;  %v124_v19 = vsel %vm122_vm0, %v119_v11, %v120_v12  ;;  %p905_p13 = scmp.lt.s32.totalorder %s588_s29, %s588_s29 }
  0x60   :  { %v125_v20 = vsel %vm122_vm0, %v118_v10, %v119_v11  ;;  %v127_v21 = vrot.slane %v1075_v4, 3  ;;  %v129_v22 = vrot.slane %v1079_v6, 3  ;;  %v116_v25 = vsel %vm113_vm1, %v107_v13, %v108_v14 }
  0x61   :  { %v746_v23 = vpack.i.bf16 %v124_v19, %v125_v20  ;;  %v115_v24 = vsel %vm113_vm1, %v108_v14, %v109_v15  ;;  %v123_v26 = vsel %vm122_vm0, %v120_v12, %v121_v16  ;;  %v126_v28 = vsel %vm122_vm0, %v121_v16, %v118_v10  ;;  %665 = vmatpush3.bf16.msra.mxu0 %v767_v9  ;;  %v775_v16 = vld [vmem:[#allocation8 + $0x8] sm:$0xff]   ;;  %v778_v19 = vld [vmem:[#allocation8 + $0x20] sm:$0xff]  }
  0x62   :  { %v736_v27 = vpack.i.bf16 %v115_v24, %v116_v25  ;;  %v114_v29 = vsel %vm113_vm1, %v109_v15, %v110_v17  ;;  %v117_v30 = vsel %vm113_vm1, %v110_v17, %v107_v13  ;;  %v751_v31 = vpack.i.bf16 %v126_v28, %v123_v26  ;;  %666 = vmatprep.subr.bf16.mxu0 %v768_v18  ;;  %v776_v17 = vld [vmem:[#allocation8 + $0x10] sm:$0xff]   ;;  %v779_v20 = vld [vmem:[#allocation8 + $0x28] sm:$0xff]   ;;  %v785_v26 = vld [vmem:[#allocation10 + $0x18] sm:$0xff]  }
  0x63   :  { %747 = vrot.lane.b32.xlu1 %v746_v23, %s932_s17  ;;  %v130_v32 = vrot.slane %v1081_v7, 3  ;;  %v128_v33 = vrot.slane %v1077_v5, 3  ;;  %v741_v34 = vpack.i.bf16 %v117_v30, %v114_v29  ;;  %vm194_vm5 = vcmask 785408   ;;  %v782_v23 = vld [vmem:[#allocation10] sm:$0xff]   ;;  %v783_v24 = vld [vmem:[#allocation10 + $0x8] sm:$0xff]   ;;  %v784_v25 = vld [vmem:[#allocation10 + $0x10] sm:$0xff]  }
  0x64   :  { %737 = vrot.lane.b32.xlu0 %v736_v27, %s939_s6  ;;  %v941_v15 = vmov 0.0   ;;  %vm942_vm6 = vmmov 0   ;;  %v786_v27 = vld [vmem:[#allocation10 + $0x20] sm:$0xff]   ;;  %v787_v28 = vld [vmem:[#allocation10 + $0x28] sm:$0xff]   ;;  %v314_v30 = vld [vmem:[#allocation7] sm:$0xff]  ;;  %vm375_vm7 = vcmask 1041409  }
  0x65   :  { %v132_v36 = vsel %vm131_vm2, %v129_v22, %v130_v32  ;;  %v135_v37 = vsel %vm131_vm2, %v130_v32, %v127_v21  ;;  %v133_v38 = vsel %vm131_vm2, %v128_v33, %v129_v22  ;;  %v134_v39 = vsel %vm131_vm2, %v127_v21, %v128_v33  ;;  %667 = vmatpush3.bf16.msra.mxu0 %v768_v18  ;;  %v777_v18 = vld [vmem:[#allocation8 + $0x18] sm:$0xff]   ;;  %v780_v21 = vld [vmem:[#allocation8 + $0x30] sm:$0xff]  }
  0x66   :  { %v761_v41 = vpack.i.bf16 %v135_v37, %v132_v36  ;;  %v756_v42 = vpack.i.bf16 %v133_v38, %v134_v39  ;;  %668 = vmatprep.subr.bf16.mxu0 %v769_v35  ;;  %682 = vmatprep.subr.bf16.mxu1 %v941_v15  ;;  %v781_v22 = vld [vmem:[#allocation8 + $0x38] sm:$0xff]  }
  0x67   :  { %752 = vrot.lane.b32.xlu1 %v751_v31, %s932_s17  ;;  %698 = vmatprep.mubr.msk.bf16.mxu1 %vm942_vm6, %v941_v15  ;;  %v315_v31 = vld [vmem:[#allocation7 + $0x8] sm:$0xff] }
  0x68   :  { %742 = vrot.lane.b32.xlu0 %v741_v34, %s939_s6 }
  0x69   :  { %669 = vmatpush3.bf16.msra.mxu0 %v769_v35 }
  0x6a   :  { %670 = vmatprep.subr.bf16.mxu0 %v770_v40 }
  0x6b   :  { %762 = vrot.lane.b32.xlu1 %v761_v41, %s940_s18 }
  0x6c   :  { %757 = vrot.lane.b32.xlu0 %v756_v42, %s940_s18 }
  0x6d   :  { %671 = vmatpush3.bf16.msra.mxu0 %v770_v40 }
  0x6e   :  { %672 = vmatprep.subr.bf16.mxu0 %v771_v43 }
  0x71   :  { %673 = vmatpush3.bf16.msra.mxu0 %v771_v43 }
  0x72   :  { %674 = vmatprep.subr.bf16.mxu0 %v772_v44 }
  0x75   :  { %675 = vmatpush3.bf16.msra.mxu0 %v772_v44 }
  0x76   :  { %676 = vmatprep.subr.bf16.mxu0 %v773_v45 }
  0x79   :  { %677 = vmatpush3.bf16.msra.mxu0 %v773_v45 }
  0x7a   :  { %702 = vmatprep.subr.bf16.mxu0 %v941_v15 }
  0xd5   :  { %v748_v46 = vpop.permute.xlu1 %747 }
  0xd6   :  { %v738_v47 = vpop.permute.xlu0 %737  ;;  %v750_v56 = vunpack.i.h.bf16 %v748_v46  ;;  %v749_v57 = vunpack.i.l.bf16 %v748_v46 }
  0xd7   :  { %v740_v48 = vunpack.i.h.bf16 %v738_v47  ;;  %v739_v49 = vunpack.i.l.bf16 %v738_v47 }
  0xd9   :  { %v753_v50 = vpop.permute.xlu1 %752  ;;  %v185_v61 = vsel %vm184_vm3, %v1075_v4, %v739_v49  ;;  %v186_v62 = vsel %vm184_vm3, %v1077_v5, %v740_v48  ;;  %v774_v5 = vld [vmem:[#allocation8] sm:$0xff]  }
  0xda   :  { %v743_v51 = vpop.permute.xlu0 %742  ;;  %v755_v52 = vunpack.i.h.bf16 %v753_v50  ;;  %v754_v53 = vunpack.i.l.bf16 %v753_v50  ;;  %v190_v10 = vsel %vm189_vm4, %v185_v61, %v749_v57  ;;  %v191_v11 = vsel %vm189_vm4, %v186_v62, %v750_v56  ;;  %683 = vmatpush3.bf16.msra.mxu1 %v774_v5  ;;  %v606_v50 = vld [vmem:[%s1159_s3] ss:$0 sm:$0xff] }
  0xdb   :  { %v745_v54 = vunpack.i.h.bf16 %v743_v51  ;;  %v744_v55 = vunpack.i.l.bf16 %v743_v51  ;;  %684 = vmatprep.subr.bf16.mxu1 %v941_v15 }
  0xdd   :  { %v188_v58 = vsel %vm184_vm3, %v1081_v7, %v745_v54  ;;  %v187_v59 = vsel %vm184_vm3, %v1079_v6, %v744_v55  ;;  %v763_v60 = vpop.permute.xlu1 %762 }
  0xde   :  { %v765_v63 = vunpack.i.h.bf16 %v763_v60  ;;  %v764_v0 = vunpack.i.l.bf16 %v763_v60  ;;  %v758_v1 = vpop.permute.xlu0 %757  ;;  %v192_v8 = vsel %vm189_vm4, %v187_v59, %v754_v53  ;;  %v193_v9 = vsel %vm189_vm4, %v188_v58, %v755_v52  ;;  %685 = vmatpush3.bf16.msra.mxu1 %v775_v16 }
  0xdf   :  { %v760_v2 = vunpack.i.h.bf16 %v758_v1  ;;  %v759_v3 = vunpack.i.l.bf16 %v758_v1  ;;  %686 = vmatprep.subr.bf16.mxu1 %v941_v15  ;;  %v788_v1 = vld [vmem:[#allocation10 + $0x30] sm:$0xff]  }
  0xe0   :  { %v197_v12 = vsel %vm194_vm5, %v192_v8, %v764_v0  ;;  %v198_v7 = vsel %vm194_vm5, %v193_v9, %v765_v63 }
  0xe1   :  { %v195_v6 = vsel %vm194_vm5, %v190_v10, %v759_v3  ;;  %v196_v13 = vsel %vm194_vm5, %v191_v11, %v760_v2  ;;  %v200_v4 = vpack.c.bf16 %v198_v7, %v197_v12  ;;  %v789_v2 = vld [vmem:[#allocation10 + $0x38] sm:$0xff]   ;;  %v607_v3 = vld [vmem:[%s1161_s5] ss:$0 sm:$0xff]  ;;  %s900_s5 = scalar_lea.vmem %s588_s29, 32 }
  0xe2   :  { %v199_v14 = vpack.c.bf16 %v196_v13, %v195_v6  ;;  %687 = vmatpush3.bf16.msra.mxu1 %v776_v17  ;;  %v616_v13 = vld [vmem:[%s1163_s7] ss:$0 sm:$0xff]  ;;  %p901_p12 = scmp.ne.s32.totalorder %s588_s29, %s900_s5  ;;  %p906_p0 = scmp.lt.s32.totalorder %s900_s5, %s900_s5 }
  0xe3   :  { %688 = vmatprep.subr.bf16.mxu1 %v941_v15 }
  0xe4   :  { %678 = vmatprep.mubr.bf16.mxu0 %v199_v14  ;;  %p907_p1 = por %p906_p0, %p905_p13 }
  0xe5   :  { %679 = vmatmul.mubr.bf16.vlgmr.msra.gmra.mrb[0].mxu0 %v200_v4 }
  0xe6   :  { %689 = vmatpush3.bf16.msra.mxu1 %v777_v18  ;;  %718 = vmatprep.mubr.msk.bf16.mxu0 %vm942_vm6, %v941_v15  ;;  %p908_p2 = pnand %p907_p1, %p901_p12 }
  0xe7   :  { %690 = vmatprep.subr.bf16.mxu1 %v941_v15  ;;  %703 = vmatpush3.bf16.msra.mxu0 %v782_v23 }
  0xe8   :  { %704 = vmatprep.subr.bf16.mxu0 %v941_v15 }
  0xea   :  { %691 = vmatpush3.bf16.msra.mxu1 %v778_v19 }
  0xeb   :  { %692 = vmatprep.subr.bf16.mxu1 %v941_v15  ;;  %705 = vmatpush3.bf16.msra.mxu0 %v783_v24 }
  0xec   :  { %706 = vmatprep.subr.bf16.mxu0 %v941_v15 }
  0xee   :  { %693 = vmatpush3.bf16.msra.mxu1 %v779_v20 }
  0xef   :  { %694 = vmatprep.subr.bf16.mxu1 %v941_v15  ;;  %707 = vmatpush3.bf16.msra.mxu0 %v784_v25 }
  0xf0   :  { %708 = vmatprep.subr.bf16.mxu0 %v941_v15 }
  0xf2   :  { %695 = vmatpush3.bf16.msra.mxu1 %v780_v21 }
  0xf3   :  { %696 = vmatprep.subr.bf16.mxu1 %v941_v15  ;;  %709 = vmatpush3.bf16.msra.mxu0 %v785_v26 }
  0xf4   :  { %710 = vmatprep.subr.bf16.mxu0 %v941_v15 }
  0xf6   :  { %697 = vmatpush3.bf16.msra.mxu1 %v781_v22 }
  0xf7   :  { %711 = vmatpush3.bf16.msra.mxu0 %v786_v27 }
  0xf8   :  { %712 = vmatprep.subr.bf16.mxu0 %v941_v15 }
  0xfb   :  { %713 = vmatpush3.bf16.msra.mxu0 %v787_v28 }
  0xfc   :  { %714 = vmatprep.subr.bf16.mxu0 %v941_v15 }
  0xff   :  { %715 = vmatpush3.bf16.msra.mxu0 %v788_v1 }
 0x100   :  { %716 = vmatprep.subr.bf16.mxu0 %v941_v15 }
 0x103   :  { %717 = vmatpush3.bf16.msra.mxu0 %v789_v2 }
 0x1b8   :  { %v680_v29 = vpop.f32.mrb[0].mxu0 }
 0x1b9   :  { %v299_v32 = vpop.f32.mrb[1].mxu0  ;;  %v318_v34 = vadd.f32 %v680_v29, %v314_v30 }
 0x1ba   :  { %v681_v33 = vpop.f32.mrb[2].mxu0  ;;  %v316_v37 = vadd.f32 %v314_v30, %v299_v32 }
 0x1bb   :  { %v319_v35 = vadd.f32 %v681_v33, %v315_v31  ;;  %v302_v36 = vpop.f32.mrb[3].mxu0 }
 0x1bc   :  { %v317_v38 = vadd.f32 %v315_v31, %v302_v36 }
 0x1bd   :  { %v327_v39 = vmax.f32 %v318_v34, %v319_v35 }
 0x1be   :  { %v320_v40 = vmax.f32 %v316_v37, %v317_v38 }
 0x1bf   :  { %v328_v41 = vrot.slane %v327_v39, 4 }
 0x1c0   :  { %v321_v42 = vrot.slane %v320_v40, 4 }
 0x1c1   :  { %v329_v43 = vmax.f32 %v327_v39, %v328_v41 }
 0x1c2   :  { %v322_v44 = vmax.f32 %v320_v40, %v321_v42 }
 0x1c3   :  { %v330_v45 = vrot.slane %v329_v43, 2 }
 0x1c4   :  { %v323_v46 = vrot.slane %v322_v44, 2 }
 0x1c5   :  { %v331_v47 = vmax.f32 %v329_v43, %v330_v45 }
 0x1c6   :  { %v324_v48 = vmax.f32 %v322_v44, %v323_v46 }
 0x1c7   :  { %v332_v49 = vrot.slane %v331_v47, 1 }
 0x1c8   :  { %v325_v51 = vrot.slane %v324_v48, 1 }
 0x1c9   :  { %v333_v52 = vmax.f32 %v331_v47, %v332_v49 }
 0x1ca   :  { %v326_v53 = vmax.f32 %v324_v48, %v325_v51 }
 0x1cb   :  { %v342_v54 = vadd.f32 %v606_v50, %v333_v52 }
 0x1cc   :  { %v341_v55 = vadd.f32 %v606_v50, %v326_v53 }
 0x1cd   :  { %v344_v56 = vmax.f32 %v342_v54, 0.0 }
 0x1ce   :  { %v343_v57 = vmax.f32 %v341_v55, 0.0 }
 0x1cf   :  { %v346_v58 = vpack.c.bf16 %v344_v56, %v344_v56 }
 0x1d0   :  { %v345_v59 = vpack.c.bf16 %v343_v57, %v343_v57 }
 0x1d1   :  { %v373_v60 = vunpack.c.l.b16 %v346_v58 }
 0x1d2   :  { %v372_v61 = vunpack.c.l.b16 %v345_v59 }
 0x1d3   :  { %v374_v62 = vrot.slane %v373_v60, 7 }
 0x1d5   :  { %v376_v63 = vsel %vm375_vm7, %v374_v62, %v372_v61 }
 0x1d6   :  { %v377_v0 = vpack.c.b16 %v376_v63, %v376_v63 }
 0x1d8   :  { %699 = vmatmul.mubr.bf16.vlgmr.msra.gmra.mrb[0].mxu1 %v377_v0 }
 0x2ab   :  { %v461_v8 = vpop.f32.mrb[0].mxu1 }
 0x2ac   :  { %v462_v9 = vadd.f32 %v607_v3, %v461_v8  ;;  %v700_v10 = vpop.f32.mrb[1].mxu1 }
 0x2ad   :  { %v464_v11 = vpop.f32.mrb[2].mxu1 }
 0x2ae   :  { %v467_v12 = vmax.f32 %v462_v9, 0.0  ;;  %v701_v7 = vpop.f32.mrb[3].mxu1 }
 0x2b0   :  { %v468_v6 = vpack.c.bf16 %v467_v12, %v467_v12 }
 0x2b2   :  { %719 = vmatmul.mubr.bf16.vlgmr.msra.gmra.mrb[4].mxu0 %v468_v6 }
 0x385   :  { %v574_v4 = vpop.f32.mrb[4].mxu0 }
 0x386   :  { %v575_v14 = vadd.f32 %v616_v13, %v574_v4  ;;  %v720_v5 = vpop.f32.mrb[5].mxu0 }
 0x387   :  { %v577_v15 = vpop.f32.mrb[6].mxu0 }
 0x388   :  { %580 = vst [vmem:[#allocation11] sm:$0x3] %v575_v14  ;;  %v721_v16 = vpop.f32.mrb[7].mxu0 }
 0x389   :  { %911 = shalt.err (!%p908_p2)
}
 0x38a   :  { %s912_s7 = scalar_lea.hbm %s1164_s8, 32 }
 0x38b   :  { %p913_p3 = scmp.ne.s32.totalorder %s1164_s8, %s912_s7  ;;  %p916_p4 = scmp.lt.u32.totalorder %s912_s7, %s1164_s8 }
 0x38d   :  { %p918_p5 = pnand %p916_p4, %p913_p3 }
 0x38f   :  { %921 = shalt.err (!%p918_p5)
}
 0x390   :  { %590 = dma.vmem_to_hbm [thread:$0]  %s588_s29, 32, %s1164_s8, [#allocation4]  }
 0x391   :  { %928 = dma.done.wait [#allocation4], 32  }
 0x392   :  { %929 = vsyncadd [#allocation4], 4294967264 }
 0x393   :  { %594 = vsyncpa [#allocation3], 1 }
 0x394   :  { %595 = vsyncpa [#allocation6], 1 }
 0x395   :  { %596 = vsyncpa [#allocation9], 1 }
 0x396   :  { %597 = vsyncpa [#allocation4], 1 }

</bundles_post_ra>
